<compile_context>
chip_gen: v7x
topology: tpu7x:2x2x1
jax: 0.10.0
libtpu: 0.0.40
codegen_flags: <defaults>
</compile_context>

<pallas_src>
import functools

import jax
import jax.numpy as jnp
from jax import lax
from jax.experimental import pallas as pl
from jax.experimental.pallas import tpu as pltpu

# ---------------- synthetic RobertaConfig (scaled-down, lane-dense HIDDEN) -----------
VOCAB = 128
HIDDEN = 128            # multiple of 128 -> lane-dense activations/outputs
NUM_HEADS = 4
HEAD_DIM = HIDDEN // NUM_HEADS
FFN = 512
NUM_LAYERS = 2
MAX_POS = 130
TYPE_VOCAB = 2
PAD_ID = 1              # RoBERTa convention (config.pad_token_id)
EPS = 1e-5              # config.layer_norm_eps
NEG_INF = -1e30
VMEM_LIMIT = 32 * 1024 * 1024    # safe on v5e/v6e/v7x at these tile sizes


def _round_up(x, m):
    return ((x + m - 1) // m) * m


def _layernorm_f32(x, g, b, eps=EPS):
    mu = jnp.mean(x, axis=-1, keepdims=True)
    xc = x - mu
    var = jnp.mean(xc * xc, axis=-1, keepdims=True)
    return xc * lax.rsqrt(var + eps) * g + b


# ---------------- kernel 1: embedding LayerNorm (summed embeddings -> LN) -------------
def embed_ln_kernel(x_ref, g_ref, b_ref, o_ref):
    o_ref[...] = _layernorm_f32(x_ref[...].astype(jnp.float32),
                                g_ref[...], b_ref[...]).astype(o_ref.dtype)


# ---------------- kernel 2: fused BERT layer ------------------------------------------
# grid = (q_tile, kv_tile); heads folded into the body; QKV computed in-kernel.
def bert_layer_kernel(starts_ref,                     # SMEM (num_seqs+1,) scalar prefetch
                      xq_ref, xkv_ref,                # hidden, tiled two ways
                      wq_ref, bq_ref, wkv_ref, bkv_ref,
                      wo_ref, bo_ref, g1_ref, b1_ref,
                      w1_ref, fb1_ref, w2_ref, fb2_ref, g2_ref, b2_ref,
                      o_ref,
                      q_sc, m_sc, l_sc, acc_sc,
                      *, num_seqs, blk_q, blk_kv):
    i = pl.program_id(0)          # q-token tile
    j = pl.program_id(1)          # kv-token tile
    nkv = pl.num_programs(1)
    total = starts_ref[num_seqs]  # number of real (non-pad) tokens

    q_start = i * blk_q
    k_start = j * blk_kv
    q_valid = q_start < total     # false only for fully-padded q tiles

    # scalar segment id of a token index (count of sequence starts <= idx), from SMEM.
    def seg_of(idx):
        s = jnp.int32(0)
        for t in range(num_seqs):
            s = s + (idx >= starts_ref[t]).astype(jnp.int32)
        return s

    q_seg_lo = seg_of(q_start)
    q_seg_hi = seg_of(q_start + blk_q - 1)
    k_seg_lo = seg_of(k_start)
    k_seg_hi = seg_of(k_start + blk_kv - 1)
    # block-diagonal mask => only tiles whose segment ranges intersect do any work.
    tile_live = jnp.logical_and(
        jnp.logical_and(q_seg_lo <= k_seg_hi, k_seg_lo <= q_seg_hi),
        jnp.logical_and(q_valid, k_start < total))

    # ---- per-q-tile init: Q projection (scale folded in) + online-softmax state ----
    @pl.when(j == 0)
    def _():
        q = (jnp.dot(xq_ref[...], wq_ref[...], preferred_element_type=jnp.float32)
             + bq_ref[...])
        q_sc[...] = (q * (1.0 / (HEAD_DIM ** 0.5))).astype(q_sc.dtype)
        m_sc[...] = jnp.full_like(m_sc, -jnp.inf)
        l_sc[...] = jnp.zeros_like(l_sc)
        acc_sc[...] = jnp.zeros_like(acc_sc)

    # ---- live (q_tile, kv_tile) pairs: K/V projection + per-head online softmax ----
    @pl.when(tile_live)
    def _():
        xkv = xkv_ref[...]
        kv = (jnp.dot(xkv, wkv_ref[...], preferred_element_type=jnp.float32)
              + bkv_ref[...]).astype(jnp.bfloat16)          # (blk_kv, 2H)
        k_all = kv[:, :HIDDEN]
        v_all = kv[:, HIDDEN:]

        # block-diagonal validity mask rebuilt from SMEM boundaries (no [T,T] HBM mask).
        q_idx = q_start + lax.broadcasted_iota(jnp.int32, (blk_q, 1), 0)
        k_idx = k_start + lax.broadcasted_iota(jnp.int32, (1, blk_kv), 1)
        seg_q = jnp.zeros((blk_q, 1), jnp.int32)
        seg_k = jnp.zeros((1, blk_kv), jnp.int32)
        for t in range(num_seqs):                 # tiny static loop over SMEM scalars
            start = starts_ref[t]
            seg_q = seg_q + (q_idx >= start).astype(jnp.int32)
            seg_k = seg_k + (k_idx >= start).astype(jnp.int32)
        valid = (seg_q == seg_k) & (k_idx < total)            # (blk_q, blk_kv)

        for h in range(NUM_HEADS):                # heads folded into the body (unrolled)
            hs = slice(h * HEAD_DIM, (h + 1) * HEAD_DIM)
            # transpose-free "NT" matmul: contract last dims of q and k on the MXU.
            s_qk = lax.dot_general(q_sc[:, hs], k_all[:, hs],
                                   (((1,), (1,)), ((), ())),
                                   preferred_element_type=jnp.float32)
            s_qk = jnp.where(valid, s_qk, NEG_INF)
            m_prev = m_sc[h]
            m_new = jnp.maximum(m_prev, jnp.max(s_qk, axis=-1, keepdims=True))
            p = jnp.where(valid, jnp.exp(s_qk - m_new), 0.0)  # explicit mask: robust
            alpha = jnp.exp(m_prev - m_new)
            l_sc[h] = alpha * l_sc[h] + jnp.sum(p, axis=-1, keepdims=True)
            acc_sc[h] = alpha * acc_sc[h] + jnp.dot(
                p.astype(v_all.dtype), v_all[:, hs],
                preferred_element_type=jnp.float32)
            m_sc[h] = m_new

    last_j = j == nkv - 1

    # ---- epilogue: normalize heads, ONE full-width out-proj, residual LN, FFN, LN ----
    @pl.when(jnp.logical_and(last_j, q_valid))
    def _():
        parts = []
        for h in range(NUM_HEADS):
            inv_l = pl.reciprocal(l_sc[h] + 1e-30, approx=True)
            parts.append(acc_sc[h] * inv_l)
        ctx = jnp.concatenate(parts, axis=-1).astype(jnp.bfloat16)     # (blk_q, H)
        attn = (jnp.dot(ctx, wo_ref[...], preferred_element_type=jnp.float32)
                + bo_ref[...])
        h1 = _layernorm_f32(xq_ref[...].astype(jnp.float32) + attn,
                            g1_ref[...], b1_ref[...])
        ff = jnp.dot(h1.astype(jnp.bfloat16), w1_ref[...],
                     preferred_element_type=jnp.float32) + fb1_ref[...]
        # TODO(synk): HF BERT uses exact erf-GELU; tanh-approx GELU keeps the TPU lowering clean.
        ff = jax.nn.gelu(ff, approximate=True)
        y = jnp.dot(ff.astype(jnp.bfloat16), w2_ref[...],
                    preferred_element_type=jnp.float32) + fb2_ref[...]
        o_ref[...] = _layernorm_f32(h1 + y, g2_ref[...], b2_ref[...]).astype(o_ref.dtype)

    # fully-padded q tiles: write deterministic zeros (kept finite for the next layer).
    @pl.when(jnp.logical_and(last_j, jnp.logical_not(q_valid)))
    def _():
        o_ref[...] = jnp.zeros_like(o_ref)


# ---------------- wrappers ----------------
def embed_layernorm(emb_sum, gamma, beta, *, blk):
    t_pad = emb_sum.shape[0]
    return pl.pallas_call(
        embed_ln_kernel,
        grid=(t_pad // blk,),
        in_specs=[
            pl.BlockSpec((blk, HIDDEN), lambda i: (i, 0)),
            pl.BlockSpec((1, HIDDEN), lambda i: (0, 0)),
            pl.BlockSpec((1, HIDDEN), lambda i: (0, 0)),
        ],
        out_specs=pl.BlockSpec((blk, HIDDEN), lambda i: (i, 0)),
        out_shape=jax.ShapeDtypeStruct((t_pad, HIDDEN), jnp.bfloat16),
        compiler_params=pltpu.CompilerParams(
            dimension_semantics=("parallel",),
            vmem_limit_bytes=VMEM_LIMIT),
    )(emb_sum, gamma, beta)


def bert_layer(hidden, seq_starts, lp, *, blk_q, blk_kv, num_seqs):
    t_pad = hidden.shape[0]
    nt_q = t_pad // blk_q
    nt_kv = t_pad // blk_kv
    H = HIDDEN

    # fuse K and V projection weights into one lane-dense (H, 2H) matmul operand.
    wkv = jnp.concatenate([lp["wk"], lp["wv"]], axis=1)          # (H, 2H) bf16
    bkv = jnp.concatenate([lp["bk"], lp["bv"]], axis=1)          # (1, 2H) f32

    kernel = functools.partial(bert_layer_kernel, num_seqs=num_seqs,
                               blk_q=blk_q, blk_kv=blk_kv)
    grid_spec = pltpu.PrefetchScalarGridSpec(
        num_scalar_prefetch=1,
        grid=(nt_q, nt_kv),
        in_specs=[
            pl.BlockSpec((blk_q, H), lambda i, j, starts: (i, 0)),     # x (q rows / residual)
            pl.BlockSpec((blk_kv, H), lambda i, j, starts: (j, 0)),    # x (kv rows)
            pl.BlockSpec((H, H), lambda i, j, starts: (0, 0)),         # wq
            pl.BlockSpec((1, H), lambda i, j, starts: (0, 0)),         # bq
            pl.BlockSpec((H, 2 * H), lambda i, j, starts: (0, 0)),     # wkv
            pl.BlockSpec((1, 2 * H), lambda i, j, starts: (0, 0)),     # bkv
            pl.BlockSpec((H, H), lambda i, j, starts: (0, 0)),         # wo (full width)
            pl.BlockSpec((1, H), lambda i, j, starts: (0, 0)),         # bo
            pl.BlockSpec((1, H), lambda i, j, starts: (0, 0)),         # ln1_g
            pl.BlockSpec((1, H), lambda i, j, starts: (0, 0)),         # ln1_b
            pl.BlockSpec((H, FFN), lambda i, j, starts: (0, 0)),       # w1
            pl.BlockSpec((1, FFN), lambda i, j, starts: (0, 0)),       # b1
            pl.BlockSpec((FFN, H), lambda i, j, starts: (0, 0)),       # w2
            pl.BlockSpec((1, H), lambda i, j, starts: (0, 0)),         # b2
            pl.BlockSpec((1, H), lambda i, j, starts: (0, 0)),         # ln2_g
            pl.BlockSpec((1, H), lambda i, j, starts: (0, 0)),         # ln2_b
        ],
        out_specs=pl.BlockSpec((blk_q, H), lambda i, j, starts: (i, 0)),
        scratch_shapes=[
            pltpu.VMEM((blk_q, H), jnp.bfloat16),                 # scaled Q for this q tile
            pltpu.VMEM((NUM_HEADS, blk_q, 1), jnp.float32),       # running max
            pltpu.VMEM((NUM_HEADS, blk_q, 1), jnp.float32),       # running denom
            pltpu.VMEM((NUM_HEADS, blk_q, HEAD_DIM), jnp.float32),  # per-head context acc
        ],
    )
    return pl.pallas_call(
        kernel,
        grid_spec=grid_spec,
        out_shape=jax.ShapeDtypeStruct((t_pad, H), jnp.bfloat16),
        compiler_params=pltpu.CompilerParams(
            # q-tile axis "parallel" (v7x megacore), kv axis carries accumulators.
            dimension_semantics=("parallel", "arbitrary"),
            vmem_limit_bytes=VMEM_LIMIT),
    )(seq_starts, hidden, hidden, lp["wq"], lp["bq"], wkv, bkv,
      lp["wo"], lp["bo"], lp["ln1_g"], lp["ln1_b"],
      lp["w1"], lp["b1"], lp["w2"], lp["b2"], lp["ln2_g"], lp["ln2_b"])


# ---------------- parameters (deterministic) ----------------
def build_params(key):
    keys = jax.random.split(key, 3 + NUM_LAYERS)
    init = lambda k, shape: (0.02 * jax.random.normal(k, shape, jnp.float32)).astype(jnp.bfloat16)
    params = {
        "word_emb": init(keys[0], (VOCAB, HIDDEN)),
        "pos_emb": init(keys[1], (MAX_POS, HIDDEN)),
        "tok_emb": init(keys[2], (TYPE_VOCAB, HIDDEN)),
        "emb_ln_g": jnp.ones((1, HIDDEN), jnp.float32),
        "emb_ln_b": jnp.zeros((1, HIDDEN), jnp.float32),
        "layers": [],
    }
    for li in range(NUM_LAYERS):
        ks = jax.random.split(keys[3 + li], 6)
        params["layers"].append({
            "wq": init(ks[0], (HIDDEN, HIDDEN)),
            "wk": init(ks[1], (HIDDEN, HIDDEN)),
            "wv": init(ks[2], (HIDDEN, HIDDEN)),
            "bq": jnp.zeros((1, HIDDEN), jnp.float32),
            "bk": jnp.zeros((1, HIDDEN), jnp.float32),
            "bv": jnp.zeros((1, HIDDEN), jnp.float32),
            "wo": init(ks[3], (HIDDEN, HIDDEN)),
            "bo": jnp.zeros((1, HIDDEN), jnp.float32),
            "ln1_g": jnp.ones((1, HIDDEN), jnp.float32),
            "ln1_b": jnp.zeros((1, HIDDEN), jnp.float32),
            "w1": init(ks[4], (HIDDEN, FFN)),
            "b1": jnp.zeros((1, FFN), jnp.float32),
            "w2": init(ks[5], (FFN, HIDDEN)),
            "b2": jnp.zeros((1, HIDDEN), jnp.float32),
            "ln2_g": jnp.ones((1, HIDDEN), jnp.float32),
            "ln2_b": jnp.zeros((1, HIDDEN), jnp.float32),
        })
    return params


# ---------------- index glue (plain JAX) ----------------
def _position_ids(input_ids, seq_lens):
    """HF create_position_ids_from_input_ids, applied per packed sequence."""
    chunks = []
    offset = 0
    for L in seq_lens:
        toks = input_ids[offset:offset + L]
        m = (toks != PAD_ID).astype(jnp.int32)
        chunks.append(jnp.cumsum(m) * m + PAD_ID)
        offset += L
    pos = jnp.concatenate(chunks).astype(jnp.int32)
    return jnp.minimum(pos, MAX_POS - 1)          # clamp guard


def _choose_blocks(T, blk_q, blk_kv):
    # multiples of 16 (bf16 sublane packing); blk_kv a multiple of blk_q (common t_pad).
    blk_q = max(16, min(blk_q, _round_up(T, 16)))
    blk_q = _round_up(blk_q, 16)
    blk_kv = max(blk_q, min(blk_kv, _round_up(T, 16)))
    blk_kv = _round_up(blk_kv, blk_q)
    return blk_q, blk_kv


# ---------------- forward pass ----------------
def xlm_roberta_forward(params, input_ids, seq_lens, *, blk_q=128, blk_kv=256):
    """input_ids: int32 [T] packed tokens; seq_lens: python list of ints (static)."""
    seq_lens = [int(l) for l in seq_lens]
    num_seqs = len(seq_lens)
    T = int(sum(seq_lens))
    blk_q, blk_kv = _choose_blocks(T, blk_q, blk_kv)
    t_pad = _round_up(T, blk_kv)
    assert t_pad % blk_q == 0 and t_pad % blk_kv == 0
    pad = t_pad - T

    position_ids = _position_ids(input_ids, seq_lens)
    token_type_ids = jnp.zeros((T,), jnp.int32)

    ids_p = jnp.pad(input_ids, (0, pad), constant_values=PAD_ID)
    pos_p = jnp.pad(position_ids, (0, pad), constant_values=PAD_ID)
    tt_p = jnp.pad(token_type_ids, (0, pad))

    # embedding-table gathers + sum: pure index glue kept in plain JAX (one read stream
    # into the LN kernel instead of three).
    we = jnp.take(params["word_emb"], ids_p, axis=0)
    pe = jnp.take(params["pos_emb"], pos_p, axis=0)
    te = jnp.take(params["tok_emb"], tt_p, axis=0)
    emb_sum = (we.astype(jnp.float32) + pe.astype(jnp.float32)
               + te.astype(jnp.float32)).astype(jnp.bfloat16)

    hidden = embed_layernorm(emb_sum, params["emb_ln_g"], params["emb_ln_b"],
                             blk=blk_kv)

    # sequence boundary offsets -> in-kernel block-diagonal mask + tile skipping (SMEM).
    starts = [0]
    for L in seq_lens:
        starts.append(starts[-1] + L)
    seq_starts = jnp.asarray(starts, jnp.int32)            # (num_seqs + 1,), last = T

    for lp in params["layers"]:
        hidden = bert_layer(hidden, seq_starts, lp,
                            blk_q=blk_q, blk_kv=blk_kv, num_seqs=num_seqs)

    # Pooler(CLS, normalize=True): first token of each sequence, L2-normalized.
    # Tiny -> plain JAX (no extra kernel launch).
    cls_idx = jnp.asarray(starts[:-1], jnp.int32)
    cls = hidden[cls_idx].astype(jnp.float32)
    norm = jnp.sqrt(jnp.sum(cls * cls, axis=-1, keepdims=True))
    return cls / jnp.maximum(norm, 1e-12)


# ---------------- pure-JAX reference (for correctness check) ----------------
def reference_forward(params, input_ids, seq_lens):
    seq_lens = [int(l) for l in seq_lens]
    T = int(sum(seq_lens))
    f32 = jnp.float32
    with jax.default_matmul_precision("float32"):
        position_ids = _position_ids(input_ids, seq_lens)
        we = params["word_emb"].astype(f32)[input_ids]
        pe = params["pos_emb"].astype(f32)[position_ids]
        te = params["tok_emb"].astype(f32)[jnp.zeros((T,), jnp.int32)]
        x = _layernorm_f32(we + pe + te, params["emb_ln_g"], params["emb_ln_b"])

        seg = jnp.concatenate(
            [jnp.full((L,), i, jnp.int32) for i, L in enumerate(seq_lens)])
        bias = jnp.where(seg[:, None] == seg[None, :], 0.0, NEG_INF).astype(f32)
        scale = 1.0 / (HEAD_DIM ** 0.5)

        for lp in params["layers"]:
            q = x @ lp["wq"].astype(f32) + lp["bq"]
            k = x @ lp["wk"].astype(f32) + lp["bk"]
            v = x @ lp["wv"].astype(f32) + lp["bv"]
            heads = []
            for h in range(NUM_HEADS):
                sl = slice(h * HEAD_DIM, (h + 1) * HEAD_DIM)
                s = q[:, sl] @ k[:, sl].T * scale + bias
                p = jax.nn.softmax(s, axis=-1)
                heads.append(p @ v[:, sl])
            attn = jnp.concatenate(heads, axis=-1) @ lp["wo"].astype(f32) + lp["bo"]
            h1 = _layernorm_f32(x + attn, lp["ln1_g"], lp["ln1_b"])
            ff = jax.nn.gelu(h1 @ lp["w1"].astype(f32) + lp["b1"], approximate=True)
            y = ff @ lp["w2"].astype(f32) + lp["b2"]
            x = _layernorm_f32(h1 + y, lp["ln2_g"], lp["ln2_b"])

        starts = [0]
        for L in seq_lens[:-1]:
            starts.append(starts[-1] + L)
        cls = x[jnp.asarray(starts, jnp.int32)]
        n = jnp.sqrt(jnp.sum(cls * cls, axis=-1, keepdims=True))
        return cls / jnp.maximum(n, 1e-12)


if __name__ == "__main__":
    key = jax.random.PRNGKey(0)
    pkey, dkey = jax.random.split(key)
    params = build_params(pkey)

    # 3 packed sequences, T = 90 tokens; blk_q=32 / blk_kv=64 -> t_pad=128, grid (4, 2):
    # exercises multi-tile online softmax, off-diagonal tile skipping, a partially-padded
    # q tile and a fully-padded q tile.
    seq_lens = [40, 25, 25]
    T = sum(seq_lens)
    input_ids = jax.random.randint(dkey, (T,), 5, VOCAB, dtype=jnp.int32)

    out = xlm_roberta_forward(params, input_ids, seq_lens, blk_q=32, blk_kv=64)
    out = jax.block_until_ready(out)
    assert out.shape == (len(seq_lens), HIDDEN)

    ref = jax.block_until_ready(reference_forward(params, input_ids, seq_lens))
    err = float(jnp.max(jnp.abs(out.astype(jnp.float32) - ref.astype(jnp.float32))))
    assert err < 5e-2, f"mismatch vs reference: max abs err = {err}"
    print("KERNEL_OK")
</pallas_src>

<mosaic_0001>
module attributes {stable_mosaic.version = 11 : i64} {
  func.func @embed_ln_kernel(%arg0: i32, %arg1: memref<64x128xbf16, #tpu.memory_space<vmem>>, %arg2: memref<1x128xf32, #tpu.memory_space<vmem>>, %arg3: memref<1x128xf32, #tpu.memory_space<vmem>>, %arg4: memref<64x128xbf16, #tpu.memory_space<vmem>>) attributes {dimension_semantics = [#tpu.dimension_semantics<parallel>], iteration_bounds = array<i64: 2>, scalar_prefetch = 0 : i64, scratch_operands = 0 : i64, tpu.core_type = #tpu.core_type<tc>, window_params = [{transform_indices = @transform_0, window_bounds = array<i64: 64, 128>}, {pipeline_mode = #tpu.pipeline_mode<synchronous>, transform_indices = @transform_1, window_bounds = array<i64: 1, 128>}, {pipeline_mode = #tpu.pipeline_mode<synchronous>, transform_indices = @transform_2, window_bounds = array<i64: 1, 128>}, {transform_indices = @transform_3, window_bounds = array<i64: 64, 128>}]} {
    %c0 = arith.constant 0 : index
    %c0_0 = arith.constant 0 : index
    %0 = vector.load %arg1[%c0, %c0_0] : memref<64x128xbf16, #tpu.memory_space<vmem>>, vector<64x128xbf16>
    %1 = arith.extf %0 : vector<64x128xbf16> to vector<64x128xf32>
    %c0_1 = arith.constant 0 : index
    %c0_2 = arith.constant 0 : index
    %2 = vector.load %arg2[%c0_1, %c0_2] : memref<1x128xf32, #tpu.memory_space<vmem>>, vector<1x128xf32>
    %c0_3 = arith.constant 0 : index
    %c0_4 = arith.constant 0 : index
    %3 = vector.load %arg3[%c0_3, %c0_4] : memref<1x128xf32, #tpu.memory_space<vmem>>, vector<1x128xf32>
    %cst = arith.constant dense<0.000000e+00> : vector<64xf32>
    %4 = vector.multi_reduction <add>, %1, %cst [1] : vector<64x128xf32> to vector<64xf32>
    %5 = vector.shape_cast %4 : vector<64xf32> to vector<64x1xf32>
    %cst_5 = arith.constant 1.280000e+02 : f32
    %6 = vector.broadcast %cst_5 : f32 to vector<64x1xf32>
    %7 = arith.divf %5, %6 : vector<64x1xf32>
    %8 = vector.broadcast %7 : vector<64x1xf32> to vector<64x128xf32>
    %9 = arith.subf %1, %8 : vector<64x128xf32>
    %10 = arith.mulf %9, %9 : vector<64x128xf32>
    %cst_6 = arith.constant dense<0.000000e+00> : vector<64xf32>
    %11 = vector.multi_reduction <add>, %10, %cst_6 [1] : vector<64x128xf32> to vector<64xf32>
    %12 = vector.shape_cast %11 : vector<64xf32> to vector<64x1xf32>
    %cst_7 = arith.constant 1.280000e+02 : f32
    %13 = vector.broadcast %cst_7 : f32 to vector<64x1xf32>
    %14 = arith.divf %12, %13 : vector<64x1xf32>
    %cst_8 = arith.constant 9.99999974E-6 : f32
    %15 = vector.broadcast %cst_8 : f32 to vector<64x1xf32>
    %16 = arith.addf %14, %15 : vector<64x1xf32>
    %17 = math.rsqrt %16 : vector<64x1xf32>
    %18 = vector.broadcast %17 : vector<64x1xf32> to vector<64x128xf32>
    %19 = arith.mulf %9, %18 : vector<64x128xf32>
    %20 = vector.broadcast %2 : vector<1x128xf32> to vector<64x128xf32>
    %21 = arith.mulf %19, %20 : vector<64x128xf32>
    %22 = vector.broadcast %3 : vector<1x128xf32> to vector<64x128xf32>
    %23 = arith.addf %21, %22 : vector<64x128xf32>
    %24 = arith.truncf %23 : vector<64x128xf32> to vector<64x128xbf16>
    %c0_9 = arith.constant 0 : index
    %c0_10 = arith.constant 0 : index
    %25 = vector.load %arg4[%c0_9, %c0_10] : memref<64x128xbf16, #tpu.memory_space<vmem>>, vector<64x128xbf16>
    tpu.vector_store %arg4[%c0_9, %c0_10], %24 {strides = array<i32>} : memref<64x128xbf16, #tpu.memory_space<vmem>>, vector<64x128xbf16>,
    return
  }
  func.func @transform_0(%arg0: i32) -> (i32, i32) {
    %c0_i32 = arith.constant 0 : i32
    %c0_i32_0 = arith.constant 0 : i32
    return %arg0, %c0_i32 : i32, i32
  }
  func.func @transform_1(%arg0: i32) -> (i32, i32) {
    %c0_i32 = arith.constant 0 : i32
    %c0_i32_0 = arith.constant 0 : i32
    %c0_i32_1 = arith.constant 0 : i32
    return %c0_i32, %c0_i32_0 : i32, i32
  }
  func.func @transform_2(%arg0: i32) -> (i32, i32) {
    %c0_i32 = arith.constant 0 : i32
    %c0_i32_0 = arith.constant 0 : i32
    %c0_i32_1 = arith.constant 0 : i32
    return %c0_i32, %c0_i32_0 : i32, i32
  }
  func.func @transform_3(%arg0: i32) -> (i32, i32) {
    %c0_i32 = arith.constant 0 : i32
    %c0_i32_0 = arith.constant 0 : i32
    return %arg0, %c0_i32 : i32, i32
  }
}

</mosaic_0001>

<bundles_post_ra>
// kernel: tpu_custom_call.1
= control target key start
LH: loop header
LB: loop body
LE: loop exit
PB: predicated region body
PF: predicated region fallthrough
CT: control target
= control target key end

     0   :  { %8 = vsyncpa [#allocation3], 0  ;;  %s931_s0 = inlined_call_operand.hbm [shape: bf16[128,128], index: 0, kind: input, shape index: {}]   ;;  %s932_s1 = inlined_call_operand.vmem [shape: f32[1,128], index: 1, kind: input, shape index: {}]   ;;  %s933_s2 = inlined_call_operand.vmem [shape: f32[1,128], index: 2, kind: input, shape index: {}]   ;;  %s934_s3 = inlined_call_operand.hbm [shape: bf16[128,128], index: 3, kind: output, shape index: {}]  }
   0x1   :  { %10 = vsyncpa [#allocation3 + $0x1], 0 }
   0x2   :  { %11 = vsyncpa [#allocation4], 0 }
   0x3   :  { %13 = vsyncpa [#allocation4 + $0x1], 0  ;;  %s719_s12 = smov 0   ;;  %s721_s13 = smov 0  }
   0x4   :  { %s723_s14 = smov 0   ;;  %s725_s15 = smov 0  }
   0x5 LB: > { %s740_s16 = sadd.s32 4294967295, %s691_s15   ;;  %s453_s17 = sadd.s32 4294967294, %s691_s15   ;;  %s691_s15 = sphi %s725_s15, %s947_s15   ;;  %s687_s14 = sphi %s723_s14, %s946_s14   ;;  %s683_s13 = sphi %s721_s13, %s945_s13   ;;  %s679_s12 = sphi %s719_s12, %s944_s12  }
   0x6   : > { %s744_s18 = sadd.s32 1, %s691_s15   ;;  %s26_s19 = sadd.s32 1, %s687_s14 }
   0x7   : > { %s23_s20 = ssub.s32 %s691_s15, %s744_s18  ;;  %p33_p0 = scmp.ne.s32.totalorder %s687_s14, %s683_s13 }
   0x8   : > { %p24_p1 = scmp.eq.s32.totalorder %s23_s20, 0  ;;  %p34_p2 = scmp.eq.s32.totalorder %s691_s15, 0 }
   0x9   : > { %p39_p3 = scmp.ne.s32.totalorder %s683_s13, %s679_s12  ;;  %p40_p4 = scmp.eq.s32.totalorder %s740_s16, 0 }
   0xa   : > { %s756_s21 = scalar_select %p24_p1, %s687_s14, %s26_s19  }
   0xb   : > { %p758_p5 = por %p34_p2, %p33_p0  ;;  %p762_p6 = por %p40_p4, %p39_p3 }
   0xc   : > { %p105_p7 = scmp.eq.s32.totalorder %s740_s16, 1  ;;  %p111_p8 = scmp.eq.s32.totalorder %s453_s17, 1 }
   0xd   : > { %p541_p10 = scmp.lt.s32.totalorder %s691_s15, 2  ;;  %s137_s26 = sand.u32 1, %s687_s14  }
   0xe   : > { %p769_p11 = por %p105_p7, %p33_p0  ;;  %p773_p12 = por %p111_p8, %p39_p3 }
   0xf   : > { %s477_s27 = sshll.u32 %s691_s15, 9  ;;  %s456_s28 = sshll.u32 %s137_s26, 5 }
  0x10   : > { %s938_s24 = scalar_select %p769_p11, 1, 0 }
  0x11   : > { %s939_s25 = scalar_select %p773_p12, 1, 0 }
  0x12   : > { %s782_s4 = scalar_lea.hbm %s931_s0, %s477_s27  ;;  %s141_s5 = scalar_lea.vmem [#allocation2], %s456_s28 }
  0x13   : > { %s148_s6 = sshll.u32 %s141_s5, 4  ;;  %p786_p13 = pnand %p541_p10, %p758_p5  ;;  %s790_s6 = int_to_ptr.vmem [resolvable:$true] %s148_s6 }
  0x14   : > { %s792_s8 = scalar_lea.sflag [#allocation3], %s137_s26  ;;  %s595_s9 = scalar_lea.hbm %s782_s4, 512 }
  0x15   : > { %p596_p0 = scmp.ne.s32.totalorder %s782_s4, %s595_s9  ;;  %p597_p1 = pneg %p786_p13 }
  0x16   : > { %s600_s17 = scalar_lea.hbm %s931_s0, 1024  ;;  %p601_p4 = scmp.lt.u32.totalorder %s782_s4, %s931_s0 }
  0x17   : > { %p598_p2 = pnand %p597_p1, %p596_p0  ;;  %p602_p5 = scmp.lt.u32.totalorder %s600_s17, %s595_s9 }
  0x18   : > { %p604_p8 = scmp.lt.u32.totalorder %s595_s9, %s782_s4 }
  0x19   : > { %p599_p3 = pneg %p598_p2  ;;  %p603_p7 = por %p602_p5, %p601_p4 }
  0x1b   : > { %p605_p10 = por %p604_p8, %p603_p7 }
  0x1d   : > { %p606_p9 = pnand %p605_p10, %p599_p3 }
  0x1f   : > { %609 = shalt.err (!%p606_p9)
}
  0x20   : > { %s610_s22 = scalar_lea.vmem %s790_s6, 512  ;;  %s693_s26 = smov [#allocation2]  }
  0x21   : > { %p611_p0 = scmp.ne.s32.totalorder %s790_s6, %s610_s22  ;;  %s615_s27 = sshll.u32 %s693_s26, 4  ;;  %s616_s27 = int_to_ptr.vmem [resolvable:$false] %s615_s27 }
  0x22   : > { %s617_s28 = scalar_lea.vmem %s616_s27, 1024  ;;  %p618_p11 = scmp.lt.s32.totalorder %s790_s6, %s616_s27 }
  0x23   : > { %p613_p2 = pnand %p611_p0, %p597_p1  ;;  %p619_p4 = scmp.lt.s32.totalorder %s617_s28, %s610_s22 }
  0x25   : > { %p614_p12 = pneg %p613_p2  ;;  %p620_p5 = por %p619_p4, %p618_p11 }
  0x27   : > { %p621_p7 = pnand %p620_p5, %p614_p12 }
  0x29   : > { %624 = shalt.err (!%p621_p7)
}
  0x2a   : > { %s694_s29 = smov 64   ;;  %s695_s30 = smov 4  }
  0x2b   : > { %536 = dma.hbm_to_vmem [thread:$0]  (!%p786_p13), %s782_s4, 512, %s790_s6, %s792_s8, %s694_s29, %s694_s29, %s695_s30  }
  0x2c   : > { %p459_p9 = scmp.ge.s32.totalorder %s691_s15, 1  ;;  %p156_p1 = scmp.lt.s32.totalorder %s691_s15, 3 }
  0x2e   : > { %p157_p3 = pnand %p459_p9, %p156_p1 }
  0x2f   : > { %s823_s5 = sand.u32 (!%p157_p3), 1, %s683_s13  }
  0x30   : > { %160 = sbr.rel (%p157_p3) target bundleno = 403 (0x193), region = 32  ;;  %s460_s9 = sshll.u32 (!%p157_p3), %s823_s5, 5 }
  0x31   : > { %s163_s10 = scalar_lea.sflag (!%p157_p3), [#allocation3], %s823_s5  ;;  %s166_s11 = scalar_lea.vmem (!%p157_p3), [#allocation2], %s460_s9 }
  0x37   : > { %670 = dma.done.wait (%p762_p6), %s163_s10, 512  }
  0x38   : > { %672 = vsyncadd (%p762_p6), %s163_s10, 4294966784  ;;  %v488_v0 = vld [vmem:[%s166_s11] sm:$0xff]   ;;  %v523_v1 = vld [vmem:[%s166_s11 + $0x8] sm:$0xff]   ;;  %s188_s8 = scalar_lea.vmem [#allocation5], %s460_s9  ;;  %s486_s17 = sshll.u32 %s740_s16, 9 }
  0x39   : > { %v489_v2 = vunpack.c.l.bf16 %v488_v0  ;;  %v493_v3 = vunpack.c.l.bf16 %v523_v1  ;;  %v490_v4 = vunpack.c.h.bf16 %v488_v0  ;;  %v494_v5 = vunpack.c.h.bf16 %v523_v1  ;;  %v524_v6 = vld [vmem:[%s166_s11 + $0x10] sm:$0xff]   ;;  %v525_v9 = vld [vmem:[%s166_s11 + $0x18] sm:$0xff]   ;;  %s380_s19 = sshll.u32 %s188_s8, 4  ;;  %s885_s26 = scalar_lea.hbm %s934_s3, %s486_s17  ;;  %s887_s19 = int_to_ptr.vmem [resolvable:$true] %s380_s19 }
  0x3a   : > { %v497_v7 = vunpack.c.l.bf16 %v524_v6  ;;  %v498_v8 = vunpack.c.h.bf16 %v524_v6  ;;  %v501_v10 = vunpack.c.l.bf16 %v525_v9  ;;  %v502_v11 = vunpack.c.h.bf16 %v525_v9  ;;  %s367_s27 = scalar_lea.sflag [#allocation4], %s823_s5  ;;  %s625_s28 = scalar_lea.vmem %s887_s19, 512 }
  0x3b   : > { %209 = vadd.xlane.f32.xlu0 %v489_v2  ;;  %213 = vadd.xlane.f32.xlu1 %v493_v3  ;;  %p626_p6 = scmp.ne.s32.totalorder %s887_s19, %s625_s28  ;;  %p941_p11 = scmp.ne.s32.totalorder %s938_s24, 0 }
  0x3c   : > { %s696_s16 = smov [#allocation5]  }
  0x3d   : > { %p627_p12 = pnand %p626_p6, %p941_p11  ;;  %s629_s29 = sshll.u32 %s696_s16, 4  ;;  %s630_s29 = int_to_ptr.vmem [resolvable:$false] %s629_s29 }
  0x3e   : > { %s631_s30 = scalar_lea.vmem %s630_s29, 1024  ;;  %p632_p8 = scmp.lt.s32.totalorder %s887_s19, %s630_s29 }
  0x3f   : > { %211 = vadd.xlane.f32.xlu0 %v490_v4  ;;  %215 = vadd.xlane.f32.xlu1 %v494_v5  ;;  %p628_p13 = pneg %p627_p12  ;;  %p633_p10 = scmp.lt.s32.totalorder %s631_s30, %s625_s28 }
  0x41   : > { %p634_p0 = por %p633_p10, %p632_p8 }
  0x43   : > { %217 = vadd.xlane.f32.xlu0 %v497_v7  ;;  %219 = vadd.xlane.f32.xlu1 %v498_v8  ;;  %p635_p2 = pnand %p634_p0, %p628_p13 }
  0x47   : > { %221 = vadd.xlane.f32.xlu0 %v501_v10  ;;  %223 = vadd.xlane.f32.xlu1 %v502_v11 }
  0xc8   : > { %v210_v12 = vpop.xlane.xlu0 %209  ;;  %v214_v13 = vpop.xlane.xlu1 %213 }
  0xc9   : > { %v226_v14 = vmul.f32 0.0078125, %v210_v12  ;;  %v228_v15 = vmul.f32 0.0078125, %v214_v13 }
  0xcb   : > { %v833_v16 = vsub.f32 %v489_v2, %v226_v14  ;;  %v835_v17 = vsub.f32 %v493_v3, %v228_v15 }
  0xcc   : > { %v212_v18 = vpop.xlane.xlu0 %211  ;;  %v216_v19 = vpop.xlane.xlu1 %215 }
  0xcd   : > { %v227_v20 = vmul.f32 0.0078125, %v212_v18  ;;  %v242_v21 = vmul.f32 %v833_v16, %v833_v16  ;;  %v229_v22 = vmul.f32 0.0078125, %v216_v19  ;;  %v244_v25 = vmul.f32 %v835_v17, %v835_v17 }
  0xcf   : > { %v839_v23 = vsub.f32 %v490_v4, %v227_v20  ;;  %250 = vadd.xlane.f32.xlu0 %v242_v21  ;;  %v841_v24 = vsub.f32 %v494_v5, %v229_v22  ;;  %v462_v4 = vld [vmem:[%s932_s1] ss:$0 sm:$0xff] }
  0xd0   : > { %v218_v26 = vpop.xlane.xlu0 %217  ;;  %v220_v27 = vpop.xlane.xlu1 %219 }
  0xd1   : > { %v230_v28 = vmul.f32 0.0078125, %v218_v26  ;;  %v243_v29 = vmul.f32 %v839_v23, %v839_v23  ;;  %v231_v30 = vmul.f32 0.0078125, %v220_v27  ;;  %v245_v33 = vmul.f32 %v841_v24, %v841_v24 }
  0xd3   : > { %v847_v31 = vsub.f32 %v497_v7, %v230_v28  ;;  %254 = vadd.xlane.f32.xlu0 %v244_v25  ;;  %252 = vadd.xlane.f32.xlu1 %v243_v29  ;;  %v849_v32 = vsub.f32 %v498_v8, %v231_v30 }
  0xd4   : > { %v222_v34 = vpop.xlane.xlu0 %221  ;;  %v224_v35 = vpop.xlane.xlu1 %223 }
  0xd5   : > { %v232_v36 = vmul.f32 0.0078125, %v222_v34  ;;  %v246_v37 = vmul.f32 %v847_v31, %v847_v31  ;;  %v233_v38 = vmul.f32 0.0078125, %v224_v35  ;;  %v247_v41 = vmul.f32 %v849_v32, %v849_v32 }
  0xd7   : > { %v855_v39 = vsub.f32 %v501_v10, %v232_v36  ;;  %256 = vadd.xlane.f32.xlu1 %v245_v33  ;;  %258 = vadd.xlane.f32.xlu0 %v246_v37  ;;  %v857_v40 = vsub.f32 %v502_v11, %v233_v38  ;;  %v463_v11 = vld [vmem:[%s933_s2] ss:$0 sm:$0xff] }
  0xd9   : > { %v248_v42 = vmul.f32 %v855_v39, %v855_v39  ;;  %v249_v43 = vmul.f32 %v857_v40, %v857_v40 }
  0xdb   : > { %260 = vadd.xlane.f32.xlu1 %v247_v41  ;;  %262 = vadd.xlane.f32.xlu0 %v248_v42 }
  0xdf   : > { %264 = vadd.xlane.f32.xlu1 %v249_v43 }
 0x15c   : > { %v251_v44 = vpop.xlane.xlu0 %250 }
 0x15d   : > { %v266_v45 = vmul.f32 0.0078125, %v251_v44 }
 0x15f   : > { %v274_v46 = vadd.f32 1e-05, %v266_v45 }
 0x160   : > { %v253_v47 = vpop.xlane.xlu1 %252  ;;  %v255_v48 = vpop.xlane.xlu0 %254 }
 0x161   : > { %579 = vrsqrt.f32 %v274_v46  ;;  %v267_v49 = vmul.f32 0.0078125, %v253_v47  ;;  %v268_v50 = vmul.f32 0.0078125, %v255_v48 }
 0x163   : > { %v275_v51 = vadd.f32 1e-05, %v267_v49  ;;  %v276_v52 = vadd.f32 1e-05, %v268_v50 }
 0x164   : > { %v257_v53 = vpop.xlane.xlu1 %256  ;;  %v259_v54 = vpop.xlane.xlu0 %258 }
 0x165   : > { %581 = vrsqrt.f32 %v275_v51  ;;  %v269_v55 = vmul.f32 0.0078125, %v257_v53  ;;  %v270_v56 = vmul.f32 0.0078125, %v259_v54 }
 0x166   : > { %583 = vrsqrt.f32 %v276_v52 }
 0x167   : > { %v277_v57 = vadd.f32 1e-05, %v269_v55  ;;  %v278_v58 = vadd.f32 1e-05, %v270_v56 }
 0x168   : > { %v261_v59 = vpop.xlane.xlu1 %260  ;;  %v263_v60 = vpop.xlane.xlu0 %262 }
 0x169   : > { %585 = vrsqrt.f32 %v277_v57  ;;  %v271_v61 = vmul.f32 0.0078125, %v261_v59  ;;  %v272_v62 = vmul.f32 0.0078125, %v263_v60 }
 0x16a   : > { %587 = vrsqrt.f32 %v278_v58 }
 0x16b   : > { %v580_v63 = vpop.eup %579  ;;  %v279_v0 = vadd.f32 1e-05, %v271_v61  ;;  %v280_v1 = vadd.f32 1e-05, %v272_v62 }
 0x16c   : > { %v290_v2 = vmul.f32 %v580_v63, %v833_v16  ;;  %v265_v3 = vpop.xlane.xlu1 %264 }
 0x16d   : > { %589 = vrsqrt.f32 %v279_v0  ;;  %v273_v5 = vmul.f32 0.0078125, %v265_v3 }
 0x16e   : > { %591 = vrsqrt.f32 %v280_v1  ;;  %v304_v9 = vmul.f32 %v462_v4, %v290_v2 }
 0x16f   : > { %v582_v6 = vpop.eup %581  ;;  %v281_v7 = vadd.f32 1e-05, %v273_v5 }
 0x170   : > { %v584_v8 = vpop.eup %583  ;;  %v291_v10 = vmul.f32 %v582_v6, %v839_v23  ;;  %v318_v16 = vadd.f32 %v463_v11, %v304_v9 }
 0x171   : > { %v292_v12 = vmul.f32 %v584_v8, %v835_v17  ;;  %593 = vrsqrt.f32 %v281_v7 }
 0x172   : > { %v305_v13 = vmul.f32 %v462_v4, %v291_v10 }
 0x173   : > { %v586_v14 = vpop.eup %585  ;;  %v306_v19 = vmul.f32 %v462_v4, %v292_v12 }
 0x174   : > { %v588_v15 = vpop.eup %587  ;;  %v319_v18 = vadd.f32 %v463_v11, %v305_v13  ;;  %v293_v20 = vmul.f32 %v586_v14, %v841_v24 }
 0x175   : > { %v294_v21 = vmul.f32 %v588_v15, %v847_v31  ;;  %v320_v17 = vadd.f32 %v463_v11, %v306_v19 }
 0x176   : > { %v506_v22 = vpack.c.bf16 %v319_v18, %v318_v16  ;;  %v307_v23 = vmul.f32 %v462_v4, %v293_v20 }
 0x177   : > { %v590_v25 = vpop.eup %589  ;;  %v308_v28 = vmul.f32 %v462_v4, %v294_v21 }
 0x178   : > { %v592_v26 = vpop.eup %591  ;;  %507 = vst [vmem:[%s188_s8] sm:$0xff] %v506_v22   ;;  %v321_v27 = vadd.f32 %v463_v11, %v307_v23  ;;  %v295_v29 = vmul.f32 %v590_v25, %v849_v32 }
 0x179   : > { %v296_v30 = vmul.f32 %v592_v26, %v855_v39  ;;  %v322_v31 = vadd.f32 %v463_v11, %v308_v28 }
 0x17a   : > { %v511_v33 = vpack.c.bf16 %v321_v27, %v320_v17  ;;  %v309_v34 = vmul.f32 %v462_v4, %v295_v29 }
 0x17b   : > { %v594_v24 = vpop.eup %593  ;;  %v310_v36 = vmul.f32 %v462_v4, %v296_v30 }
 0x17c   : > { %526 = vst [vmem:[%s188_s8 + $0x8] sm:$0xff] %v511_v33   ;;  %v323_v35 = vadd.f32 %v463_v11, %v309_v34  ;;  %v297_v37 = vmul.f32 %v594_v24, %v857_v40 }
 0x17d   : > { %v324_v42 = vadd.f32 %v463_v11, %v310_v36 }
 0x17e   : > { %v516_v38 = vpack.c.bf16 %v323_v35, %v322_v31  ;;  %v311_v41 = vmul.f32 %v462_v4, %v297_v37 }
 0x180   : > { %527 = vst [vmem:[%s188_s8 + $0x10] sm:$0xff] %v516_v38   ;;  %v325_v32 = vadd.f32 %v463_v11, %v311_v41 }
 0x182   : > { %v521_v39 = vpack.c.bf16 %v325_v32, %v324_v42 }
 0x184   : > { %528 = vst [vmem:[%s188_s8 + $0x18] sm:$0xff] %v521_v39  }
 0x185   : > { %638 = shalt.err (!%p635_p2)
}
 0x186   : > { %s639_s9 = scalar_lea.hbm %s885_s26, 512  ;;  %s643_s23 = scalar_lea.hbm %s934_s3, 1024 }
 0x187   : > { %p640_p4 = scmp.ne.s32.totalorder %s885_s26, %s639_s9  ;;  %p644_p9 = scmp.lt.u32.totalorder %s885_s26, %s934_s3 }
 0x188   : > { %p645_p1 = scmp.lt.u32.totalorder %s643_s23, %s639_s9  ;;  %p647_p6 = scmp.lt.u32.totalorder %s639_s9, %s885_s26 }
 0x189   : > { %p641_p5 = pnand %p640_p4, %p941_p11 }
 0x18a   : > { %p646_p3 = por %p645_p1, %p644_p9 }
 0x18b   : > { %p642_p7 = pneg %p641_p5 }
 0x18c   : > { %p648_p12 = por %p647_p6, %p646_p3 }
 0x18e   : > { %p649_p13 = pnand %p648_p12, %p642_p7 }
 0x190   : > { %652 = shalt.err (!%p649_p13)
}
 0x191   : > { %s697_s7 = smov 64   ;;  %s698_s8 = smov 4  }
 0x192   : > { %531 = dma.vmem_to_hbm [thread:$0]  (%p941_p11), %s887_s19, 512, %s885_s26, %s367_s27, %s697_s7, %s697_s7, %s698_s8  }
 0x193 PF: > { %s395_s17 = sand.u32 1, %s679_s12   ;;  %p942_p8 = scmp.ne.s32.totalorder %s939_s25, 0 }
 0x194   : > { %p943_p10 = scmp.ge.s32.totalorder %s691_s15, 2  ;;  %s396_s20 = scalar_lea.sflag [#allocation4], %s395_s17 }
 0x196   : > { %p538_p0 = pnand %p943_p10, %p942_p8 }
 0x198   : > { %674 = dma.done.wait (!%p538_p0), %s396_s20, 512  }
 0x199   : > { %676 = vsyncadd (!%p538_p0), %s396_s20, 4294966784  ;;  %p16_p2 = scmp.ge.s32.totalorder %s744_s18, 4   ;;  %s944_s12 = smov %s683_s13 }
 0x19a   : > { %s945_s13 = smov %s687_s14  ;;  %s946_s14 = smov %s756_s21 }
 0x19b   : > { %s947_s15 = smov %s744_s18  ;;  %18 = sbr.rel (!%p16_p2) target bundleno = 5 (0x5), region = 77 }
 0x1a2   :  { %401 = vsyncpa [#allocation3], 1 }
 0x1a3   :  { %403 = vsyncpa [#allocation3 + $0x1], 1 }
 0x1a4   :  { %404 = vsyncpa [#allocation4], 1 }
 0x1a5   :  { %406 = vsyncpa [#allocation4 + $0x1], 1 }

</bundles_post_ra>
